<compile_context>
chip_gen: v7x
topology: tpu7x:2x2x1
jax: 0.10.0
libtpu: 0.0.40
codegen_flags: <defaults>
</compile_context>

<pallas_src>
import functools
import itertools
import math

import jax
import jax.numpy as jnp
from jax import lax
from jax.experimental import pallas as pl
from jax.experimental.pallas import tpu as pltpu


def _round_up(a, b):
    return -(-a // b) * b


# ---------------------------------------------------------------------------
# Kernels: one MXU matmul per grid step; output lane axis = flattened spatial.
# ---------------------------------------------------------------------------
def _mm_kernel_2d(w_ref, p_ref, o_ref):
    # w_ref: (Cout, K)   p_ref: (K, tm)   o_ref: (Cout, tm)  -- lane-dense
    o_ref[...] = jnp.dot(
        w_ref[...], p_ref[...], preferred_element_type=jnp.float32
    ).astype(o_ref.dtype)


def _mm_kernel_3d(w_ref, p_ref, o_ref):
    # w_ref: (Cout, K)   p_ref: (K, tm)   o_ref: (1, Cout, tm)
    o_ref[0] = jnp.dot(
        w_ref[...], p_ref[...], preferred_element_type=jnp.float32
    ).astype(o_ref.dtype)


# ---------------------------------------------------------------------------
# Generation-aware VMEM sizing.
# ---------------------------------------------------------------------------
def _vmem_params():
    try:
        cap = int(pltpu.get_tpu_info().vmem_capacity_bytes)
    except Exception:  # pragma: no cover - conservative fallback (v7x-sized)
        cap = 64 * 1024 * 1024
    tile_budget = min(3 * cap // 8, 64 * 1024 * 1024)   # v7x ~24 MiB, v6e ~48 MiB
    vmem_limit = min(5 * cap // 8, 96 * 1024 * 1024)    # v7x ~40 MiB, v6e ~80 MiB
    return int(tile_budget), int(vmem_limit)


def _choose_tile(m128, K, Cout, in_bytes, budget, max_tm=4096):
    """Largest lane tile (multiple of 128, <= max_tm) whose pipelined footprint
    fits `budget`.  Patches buffers use the compute dtype; the OUTPUT buffers
    are always f32 (4 bytes) regardless of compute dtype (review fix)."""
    n_buf = 3  # allow for triple-buffered patches
    denom = n_buf * K * in_bytes + 2 * Cout * 4
    avail = max(budget - 2 * Cout * K * in_bytes, 128 * denom)
    tm = avail // denom
    tm = min(tm, m128, max_tm)
    tm = max(128, (tm // 128) * 128)
    return int(tm)


def _patches_spec(K, tm, steps):
    idx = lambda i: (0, i)
    if steps >= 4:
        # Third buffer hides DMA issue latency on long grids (v7x especially);
        # cost is one extra K*tm*in_bytes buffer, already inside the budget.
        try:
            return pl.BlockSpec((K, tm), idx, pipeline_mode=pl.Buffered(3))
        except TypeError:  # older JAX without pipeline_mode
            pass
    return pl.BlockSpec((K, tm), idx)


# ---------------------------------------------------------------------------
# im2col straight from NCDHW -> (K, N*P), K ordered (Cin, kd, kh, kw) to match
# weight.reshape(Cout, K).  All of this is one fused XLA pass over x (and is a
# candidate for allow_input_fusion into the pallas_call).
# ---------------------------------------------------------------------------
def _im2col_km(x, ksize, stride, oshape, compute_dtype):
    N, Cin = x.shape[:2]
    kD, kH, kW = ksize
    sD, sH, sW = stride
    Do, Ho, Wo = oshape
    if compute_dtype is not None and x.dtype != jnp.dtype(compute_dtype):
        x = x.astype(compute_dtype)
    slices = []
    for kd, kh, kw in itertools.product(range(kD), range(kH), range(kW)):
        s = lax.slice(
            x,
            start_indices=(0, 0, kd, kh, kw),
            limit_indices=(N, Cin,
                           kd + (Do - 1) * sD + 1,
                           kh + (Ho - 1) * sH + 1,
                           kw + (Wo - 1) * sW + 1),
            strides=(1, 1, sD, sH, sW),
        )                                             # (N, Cin, Do, Ho, Wo)
        slices.append(s)
    pat = jnp.stack(slices, axis=2)                   # (N, Cin, kvol, Do, Ho, Wo)
    pat = jnp.transpose(pat, (1, 2, 0, 3, 4, 5))      # (Cin, kvol, N, Do, Ho, Wo)
    K = Cin * kD * kH * kW
    M = N * Do * Ho * Wo
    return pat.reshape(K, M)                          # (K, M), M is N-major


# ---------------------------------------------------------------------------
# Forward (== torch.nn.Conv3d(padding=0, bias=False); lrelu_alpha unused).
# ---------------------------------------------------------------------------
def pooling_conv_forward(x_ncdhw, weight, stride,
                         compute_dtype=jnp.bfloat16, allow_input_fusion=True):
    """x_ncdhw: (N, Cin, D, H, W); weight: (Cout, Cin, kD, kH, kW).
    compute_dtype=None -> exact f32 operand path (tight-tolerance semantics);
    bf16 default keeps f32 MXU accumulation (memory-bound => ~2x less HBM)."""
    N, Cin, D, H, W = x_ncdhw.shape
    Cout, Cin_w, kD, kH, kW = weight.shape
    assert Cin_w == Cin
    if isinstance(stride, int):
        stride = (stride, stride, stride)
    sD, sH, sW = stride
    Do = (D - kD) // sD + 1
    Ho = (H - kH) // sH + 1
    Wo = (W - kW) // sW + 1
    P = Do * Ho * Wo
    K = Cin * kD * kH * kW
    M = N * P

    cdt = x_ncdhw.dtype if compute_dtype is None else jnp.dtype(compute_dtype)
    in_bytes = jnp.dtype(cdt).itemsize

    patches = _im2col_km(x_ncdhw, (kD, kH, kW), stride, (Do, Ho, Wo),
                         compute_dtype)               # (K, M)
    w2d = weight.reshape(Cout, K).astype(cdt)         # (Cout, K), VMEM-resident

    tile_budget, vmem_limit = _vmem_params()
    tm = _choose_tile(_round_up(M, 128), K, Cout, in_bytes, tile_budget)

    # If P is lane-friendly, snap tm to a divisor of P so each tile stays inside
    # one batch element and the kernel can write (N, Cout, P) directly (no
    # epilogue transpose).  Otherwise fold N into lanes and pad M to tm.
    per_batch_out = (P % 128 == 0)
    if per_batch_out:
        tm = min(tm, P)
        while P % tm:
            tm -= 128
        M_pad = M
    else:
        M_pad = _round_up(M, tm)
        if M_pad > M:
            patches = jnp.pad(patches, ((0, 0), (0, M_pad - M)))
    steps = M_pad // tm

    cost = pl.CostEstimate(
        flops=2 * Cout * K * M_pad,
        transcendentals=0,
        bytes_accessed=K * M_pad * in_bytes + Cout * M_pad * 4
                       + Cout * K * in_bytes,
    )
    cparams = pltpu.CompilerParams(
        dimension_semantics=("parallel",),
        vmem_limit_bytes=int(vmem_limit),
        allow_input_fusion=[False, True] if allow_input_fusion else None,
    )

    w_spec = pl.BlockSpec((Cout, K), lambda i: (0, 0))   # constant -> resident
    p_spec = _patches_spec(K, tm, steps)

    if per_batch_out:
        nb = P // tm
        out = pl.pallas_call(
            _mm_kernel_3d,
            out_shape=jax.ShapeDtypeStruct((N, Cout, P), jnp.float32),
            grid=(steps,),
            in_specs=[w_spec, p_spec],
            out_specs=pl.BlockSpec((1, Cout, tm),
                                   lambda i: (i // nb, 0, i % nb)),
            compiler_params=cparams,
            cost_estimate=cost,
        )(w2d, patches)
        return out.reshape(N, Cout, Do, Ho, Wo)

    out = pl.pallas_call(
        _mm_kernel_2d,
        out_shape=jax.ShapeDtypeStruct((Cout, M_pad), jnp.float32),
        grid=(steps,),
        in_specs=[w_spec, p_spec],
        out_specs=pl.BlockSpec((Cout, tm), lambda i: (0, i)),
        compiler_params=cparams,
        cost_estimate=cost,
    )(w2d, patches)
    out = out[:, :M].reshape(Cout, N, Do, Ho, Wo)
    return jnp.transpose(out, (1, 0, 2, 3, 4))


if __name__ == "__main__":
    # Module config: pooling_conv(in_channels=4, filters=8, kernel_size=2,
    #                             strides=2, lrelu_alpha=0.2, use_bias=False)
    N, Cin, D, H, W = 2, 4, 8, 8, 8
    Cout = 8
    ksize = (2, 2, 2)
    stride = (2, 2, 2)

    key = jax.random.PRNGKey(0)
    kx, kw = jax.random.split(key)
    x = jax.random.normal(kx, (N, Cin, D, H, W), dtype=jnp.float32)

    fan_in = Cin * ksize[0] * ksize[1] * ksize[2]
    bound = 1.0 / math.sqrt(fan_in)
    weight = jax.random.uniform(
        kw, (Cout, Cin) + ksize, minval=-bound, maxval=bound, dtype=jnp.float32
    )

    dn = ("NCDHW", "OIDHW", "NCDHW")

    # Default (bf16 operands, f32 accumulate) path.
    fwd = jax.jit(functools.partial(pooling_conv_forward, stride=stride))
    out_bf16 = jax.block_until_ready(fwd(x, weight))

    # Exact f32-operand path (torch.nn.Conv3d fp32 semantics).
    fwd_f32 = jax.jit(functools.partial(pooling_conv_forward, stride=stride,
                                        compute_dtype=None))
    out_f32 = jax.block_until_ready(fwd_f32(x, weight))

    # References: f32 conv, and f32 conv on bf16-rounded operands (so the bf16
    # path is compared at its own operand precision, per review).
    ref_f32 = lax.conv_general_dilated(
        x, weight, window_strides=stride, padding="VALID", dimension_numbers=dn)
    ref_bf16 = lax.conv_general_dilated(
        x.astype(jnp.bfloat16).astype(jnp.float32),
        weight.astype(jnp.bfloat16).astype(jnp.float32),
        window_strides=stride, padding="VALID", dimension_numbers=dn)

    assert out_f32.shape == ref_f32.shape == (N, Cout, 4, 4, 4), out_f32.shape
    assert out_bf16.shape == ref_f32.shape, out_bf16.shape
    assert jnp.allclose(out_f32, ref_f32, atol=1e-5, rtol=1e-5)
    assert jnp.allclose(out_bf16, ref_bf16, atol=1e-4, rtol=1e-3)

    print("KERNEL_OK")
</pallas_src>

<mosaic_0001>
module attributes {stable_mosaic.version = 11 : i64} {
  func.func @_mm_kernel_2d(%arg0: i32, %arg1: memref<8x32xbf16, #tpu.memory_space<vmem>>, %arg2: memref<32x128xbf16, #tpu.memory_space<vmem>>, %arg3: memref<8x128xf32, #tpu.memory_space<vmem>>) attributes {dimension_semantics = [#tpu.dimension_semantics<parallel>], iteration_bounds = array<i64: 1>, scalar_prefetch = 0 : i64, scratch_operands = 0 : i64, tpu.core_type = #tpu.core_type<tc>, window_params = [{pipeline_mode = #tpu.pipeline_mode<synchronous>, transform_indices = @transform_0, window_bounds = array<i64: 8, 32>}, {transform_indices = @transform_1, window_bounds = array<i64: 32, 128>}, {transform_indices = @transform_2, window_bounds = array<i64: 8, 128>}]} {
    %c0 = arith.constant 0 : index
    %c0_0 = arith.constant 0 : index
    %0 = vector.load %arg1[%c0, %c0_0] : memref<8x32xbf16, #tpu.memory_space<vmem>>, vector<8x32xbf16>
    %c0_1 = arith.constant 0 : index
    %c0_2 = arith.constant 0 : index
    %1 = vector.load %arg2[%c0_1, %c0_2] : memref<32x128xbf16, #tpu.memory_space<vmem>>, vector<32x128xbf16>
    %cst = arith.constant dense<0.000000e+00> : vector<8x128xf32>
    %2 = tpu.matmul %0, %1, %cst {dimension_numbers = #tpu.dot_dimension_numbers<[1], [0], [0], [1], [0, 0, 1, 1], [], []>} : vector<8x32xbf16>, vector<32x128xbf16>, vector<8x128xf32> -> vector<8x128xf32>
    %c0_3 = arith.constant 0 : index
    %c0_4 = arith.constant 0 : index
    %3 = vector.load %arg3[%c0_3, %c0_4] : memref<8x128xf32, #tpu.memory_space<vmem>>, vector<8x128xf32>
    tpu.vector_store %arg3[%c0_3, %c0_4], %2 {strides = array<i32>} : memref<8x128xf32, #tpu.memory_space<vmem>>, vector<8x128xf32>,
    return
  }
  func.func @transform_0(%arg0: i32) -> (i32, i32) {
    %c0_i32 = arith.constant 0 : i32
    %c0_i32_0 = arith.constant 0 : i32
    %c0_i32_1 = arith.constant 0 : i32
    return %c0_i32, %c0_i32_0 : i32, i32
  }
  func.func @transform_1(%arg0: i32) -> (i32, i32) {
    %c0_i32 = arith.constant 0 : i32
    %c0_i32_0 = arith.constant 0 : i32
    return %c0_i32, %arg0 : i32, i32
  }
  func.func @transform_2(%arg0: i32) -> (i32, i32) {
    %c0_i32 = arith.constant 0 : i32
    %c0_i32_0 = arith.constant 0 : i32
    return %c0_i32, %arg0 : i32, i32
  }
}

</mosaic_0001>

<bundles_post_ra>
// kernel: pooling_conv_forward.1
= control target key start
LH: loop header
LB: loop body
LE: loop exit
PB: predicated region body
PF: predicated region fallthrough
CT: control target
= control target key end

     0   :  { %v96_v0 = vmov 0.0   ;;  %vm97_vm0 = vmmov 0   ;;  %vm29_vm1 = vcmask 261120   ;;  %s125_s1 = inlined_call_operand.vmem [shape: bf16[32,128], index: 1, kind: input, shape index: {}]   ;;  %s126_s0 = inlined_call_operand.vmem [shape: bf16[8,32], index: 0, kind: input, shape index: {}]   ;;  %s127_s2 = inlined_call_operand.vmem [shape: f32[8,128], index: 2, kind: output, shape index: {}]  }
   0x1   :  { %84 = vmatprep.subr.bf16.mxu0 %v96_v0  ;;  %v94_v1 = vld [vmem:[%s125_s1] sm:$0xff]   ;;  %88 = vmatprep.mubr.msk.bf16.mxu0 %vm97_vm0, %v96_v0  ;;  %v95_v2 = vld [vmem:[%s125_s1 + $0x8] sm:$0xff]  }
   0x2   :  { %85 = vmatpush3.bf16.msra.mxu0 %v94_v1  ;;  %v12_v3 = vld [vmem:[%s126_s0] sm:$0xf] }
   0x3   :  { %86 = vmatprep.subr.bf16.mxu0 %v96_v0 }
   0x6   :  { %87 = vmatpush3.bf16.msra.mxu0 %v95_v2 }
   0x9   :  { %89 = vmatmul.mubr.msk.bf16.vlgmr.msra.gmra.mrb[0].mxu0 %vm29_vm1, %v12_v3 }
  0xdc   :  { %v67_v4 = vpop.f32.mrb[0].mxu0 }
  0xdd   :  { %73 = vst [vmem:[%s127_s2] sm:$0xff] %v67_v4  ;;  %v90_v5 = vpop.f32.mrb[1].mxu0 }
  0xde   :  { %v70_v6 = vpop.f32.mrb[2].mxu0 }
  0xdf   :  { %v91_v7 = vpop.f32.mrb[3].mxu0 }

</bundles_post_ra>
